<compile_context>
chip_gen: v7x
topology: tpu7x:2x2x1
jax: 0.10.0
libtpu: 0.0.40
codegen_flags: <defaults>
</compile_context>

<pallas_src>
import functools

import jax
import jax.numpy as jnp
from jax.experimental import pallas as pl
from jax.experimental.pallas import tpu as pltpu


def _round_up(n, m):
    return ((n + m - 1) // m) * m


def _cdiv(a, b):
    return -(-a // b)


def _pad_to(a, shape):
    pads = [(0, s - d) for d, s in zip(a.shape, shape)]
    if all(p == (0, 0) for p in pads):
        return a
    return jnp.pad(a, pads)


def _vmem_capacity_bytes():
    """Generation-aware VMEM capacity; conservative fallback (v7x = 64 MiB)."""
    try:
        return int(pltpu.get_tpu_info().vmem_capacity_bytes)
    except Exception:
        return 64 * 1024 * 1024


# --------------------------------------------------------------------------- #
# Kernel
# --------------------------------------------------------------------------- #
def _recursive_time_kernel(*refs, time_depth, num_row_blocks, sub_rows):
    """Whole recursive-time compression chain on one (TM, F) row tile.

    refs (time_depth > 1):
      x_ref : (TM, INP)               w0_ref: (INP, OUTP)   b0_ref: (1, OUTP)
      wr_ref: (D-1, OUTP, OUTP)       br_ref: (D-1, 1, OUTP)
      wf_ref: (OUTP, OUTP)            bf_ref: (1, OUTP)     o_ref : (TM, OUTP)
    refs (time_depth == 1): same, without wr_ref / br_ref.

    compression_factor is already folded into wr / wf by prepare_params().
    MXU operands may be bf16; accumulation, bias add and tanh stay f32.
    The row tile is split into `num_row_blocks` independent sub-blocks so the
    MXU matmul of one sub-block overlaps the EUP tanh of the other.
    """
    if time_depth > 1:
        x_ref, w0_ref, b0_ref, wr_ref, br_ref, wf_ref, bf_ref, o_ref = refs
    else:
        x_ref, w0_ref, b0_ref, wf_ref, bf_ref, o_ref = refs
        wr_ref = br_ref = None

    dot_dtype = w0_ref.dtype
    w0 = w0_ref[...]
    b0 = b0_ref[...]
    wf = wf_ref[...]
    bf = bf_ref[...]

    # depth 0: input_size -> output_size (each row sub-block independently).
    hs = []
    for s in range(num_row_blocks):
        xs = x_ref[pl.ds(s * sub_rows, sub_rows), :]
        hs.append(jnp.tanh(
            jnp.dot(xs, w0, preferred_element_type=jnp.float32) + b0))

    # depths 1 .. time_depth-1: output_size -> output_size, statically
    # unrolled; the independent sub-block chains give the LLO scheduler
    # MXU / EUP work to interleave instead of a single serial dependency.
    for d in range(time_depth - 1):
        wd = wr_ref[d]
        bd = br_ref[d]
        hs = [jnp.tanh(
            jnp.dot(h.astype(dot_dtype), wd,
                    preferred_element_type=jnp.float32) + bd)
            for h in hs]

    # final_compression (compression_factor already folded into wf).
    for s in range(num_row_blocks):
        o_ref[pl.ds(s * sub_rows, sub_rows), :] = (
            jnp.dot(hs[s].astype(dot_dtype), wf,
                    preferred_element_type=jnp.float32) + bf)


# --------------------------------------------------------------------------- #
# One-time (out of hot path) parameter preprocessing
# --------------------------------------------------------------------------- #
def prepare_params(params, *, time_depth, compression_factor,
                   compute_dtype=jnp.bfloat16):
    """Pad feature dims to lane-dense multiples of 128, fold
    compression_factor into the consuming weights (wr, wf) and cast the MXU
    operands to compute_dtype. Biases stay f32 (VPU/EUP path is f32 on all
    generations; v5e has no bf16 VPU/EUP).

    Zero padding is exact: tanh(0) = 0 and padded weight rows/cols are zero,
    so padded lanes stay 0 through the whole chain.
    """
    IN, OUT = params["w0"].shape
    INP, OUTP = _round_up(IN, 128), _round_up(OUT, 128)
    cf = jnp.float32(compression_factor)

    prepped = dict(
        w0=_pad_to(params["w0"], (INP, OUTP)).astype(compute_dtype),
        b0=_pad_to(params["b0"], (1, OUTP)).astype(jnp.float32),
        wf=_pad_to(params["wf"] * cf, (OUTP, OUTP)).astype(compute_dtype),
        bf=_pad_to(params["bf"], (1, OUTP)).astype(jnp.float32),
    )
    if time_depth > 1:
        prepped["wr"] = _pad_to(
            params["wr"] * cf, (time_depth - 1, OUTP, OUTP)).astype(compute_dtype)
        prepped["br"] = _pad_to(
            params["br"], (time_depth - 1, 1, OUTP)).astype(jnp.float32)
    return prepped


# --------------------------------------------------------------------------- #
# Forward wrapper
# --------------------------------------------------------------------------- #
def cu_recursive_time_forward(x, prepped, *, time_depth, output_size,
                              row_tile=512):
    """x: (B, T, input_size) f32, prepped: prepare_params() output
    -> (B, output_size) f32."""
    B, T, IN = x.shape
    INP, OUTP = prepped["w0"].shape
    compute_dtype = prepped["w0"].dtype
    itemsize = jnp.dtype(compute_dtype).itemsize

    # Only the last time step reaches final_compression and every Linear acts
    # independently per (b, t) row, so slice first (T x less work).  The slice
    # is kept in the wrapper (not fused into the BlockSpec) because a block of
    # sublane-extent 1 on the time axis would violate the (8, 128) tiling rule.
    x_last = x[:, -1, :]                                   # (B, IN)
    xp = _pad_to(x_last, (B, INP)).astype(compute_dtype)   # lane-dense features

    # Row tiling: remainder-aware, >= 2 grid tiles as soon as B allows it
    # (v7x megacore), sublane-pack aligned (16 rows for bf16, 8 for f32).
    row_align = 8 * (4 // itemsize)
    if B <= row_align:
        TM = row_align
    else:
        n_tiles = max(2, _cdiv(B, row_tile))
        TM = _round_up(_cdiv(B, n_tiles), row_align)
    Bp = _round_up(B, TM)
    grid = (Bp // TM,)
    xp = _pad_to(xp, (Bp, INP))

    # 2-way row sub-blocking (MXU/EUP overlap) when the tile is big enough to
    # keep each sub-block sublane-pack aligned.
    num_row_blocks = 2 if TM % (2 * row_align) == 0 else 1
    sub_rows = TM // num_row_blocks

    # VMEM budget: single-buffered weights + double-buffered x/out tiles.
    weight_bytes = sum(int(v.size) * v.dtype.itemsize for v in prepped.values())
    io_bytes = 2 * TM * INP * itemsize + 2 * TM * OUTP * 4
    vmem_cap = _vmem_capacity_bytes()
    if weight_bytes + io_bytes > int(0.9 * vmem_cap):
        # TODO(synk): when the single-buffered wr stack exceeds ~50% of the
        # per-generation VMEM budget, keep wr/br in HBM (memory_space=pl.ANY)
        # and stream one (OUTP, OUTP) weight per depth with a manual 2-deep
        # make_async_copy double buffer, holding h in VMEM scratch.
        raise NotImplementedError(
            "weight stack does not fit VMEM; depth-streaming path not built")
    vmem_limit = min(max(int(weight_bytes + io_bytes) + 8 * 2**20, 16 * 2**20),
                     int(0.9 * vmem_cap))

    # Constant-index weights/biases: single pipeline buffer (index_map is the
    # same block every grid step, so a second buffer is pure VMEM waste).
    def _const_spec(shape):
        zeros = (0,) * len(shape)
        return pl.BlockSpec(shape, lambda i, _z=zeros: _z,
                            pipeline_mode=pl.Buffered(1))

    in_specs = [pl.BlockSpec((TM, INP), lambda i: (i, 0))]      # x rows (tiled)
    args = [xp]
    in_specs += [_const_spec((INP, OUTP)), _const_spec((1, OUTP))]
    args += [prepped["w0"], prepped["b0"]]
    if time_depth > 1:
        D = time_depth - 1
        in_specs += [_const_spec((D, OUTP, OUTP)), _const_spec((D, 1, OUTP))]
        args += [prepped["wr"], prepped["br"]]
    in_specs += [_const_spec((OUTP, OUTP)), _const_spec((1, OUTP))]
    args += [prepped["wf"], prepped["bf"]]

    kernel = functools.partial(
        _recursive_time_kernel,
        time_depth=time_depth,
        num_row_blocks=num_row_blocks,
        sub_rows=sub_rows,
    )

    out_padded = pl.pallas_call(
        kernel,
        out_shape=jax.ShapeDtypeStruct((Bp, OUTP), jnp.float32),
        grid=grid,
        in_specs=in_specs,
        out_specs=pl.BlockSpec((TM, OUTP), lambda i: (i, 0)),
        compiler_params=pltpu.CompilerParams(
            dimension_semantics=("parallel",),   # shard row tiles across TCs
            vmem_limit_bytes=vmem_limit,
        ),
    )(*args)

    return out_padded[:B, :output_size]


# --------------------------------------------------------------------------- #
# Reference + synthetic init
# --------------------------------------------------------------------------- #
def init_params(key, input_size, output_size, time_depth):
    """Deterministic synthetic init, PyTorch-Linear-style uniform bounds."""
    keys = jax.random.split(key, 6)
    bound0 = 1.0 / jnp.sqrt(input_size)
    boundo = 1.0 / jnp.sqrt(output_size)
    n_rec = max(time_depth - 1, 1)
    return dict(
        w0=jax.random.uniform(keys[0], (input_size, output_size),
                              jnp.float32, -bound0, bound0),
        b0=jax.random.uniform(keys[1], (1, output_size),
                              jnp.float32, -bound0, bound0),
        wr=jax.random.uniform(keys[2], (n_rec, output_size, output_size),
                              jnp.float32, -boundo, boundo),
        br=jax.random.uniform(keys[3], (n_rec, 1, output_size),
                              jnp.float32, -boundo, boundo),
        wf=jax.random.uniform(keys[4], (output_size, output_size),
                              jnp.float32, -boundo, boundo),
        bf=jax.random.uniform(keys[5], (1, output_size),
                              jnp.float32, -boundo, boundo),
    )


def reference_forward(x, params, *, time_depth, compression_factor):
    """Pure-JAX reference mirroring the PyTorch module exactly."""
    B, T, _ = x.shape
    h = x
    for d in range(time_depth):
        h2 = h.reshape(B * T, -1)
        if d == 0:
            h2 = jnp.tanh(h2 @ params["w0"] + params["b0"])
        else:
            h2 = jnp.tanh(h2 @ params["wr"][d - 1] + params["br"][d - 1])
        h = h2.reshape(B, T, -1) * compression_factor
    return h[:, -1, :] @ params["wf"] + params["bf"]


# --------------------------------------------------------------------------- #
# Demo / self-check
# --------------------------------------------------------------------------- #
if __name__ == "__main__":
    B, T = 2, 8
    INPUT_SIZE, OUTPUT_SIZE = 32, 32
    TIME_DEPTH = 10
    COMPRESSION_FACTOR = 0.5

    key = jax.random.PRNGKey(0)
    kx, kp = jax.random.split(key)
    x = jax.random.normal(kx, (B, T, INPUT_SIZE), jnp.float32)
    params = init_params(kp, INPUT_SIZE, OUTPUT_SIZE, TIME_DEPTH)

    ref = reference_forward(
        x, params, time_depth=TIME_DEPTH, compression_factor=COMPRESSION_FACTOR)

    fwd = jax.jit(functools.partial(
        cu_recursive_time_forward,
        time_depth=TIME_DEPTH,
        output_size=OUTPUT_SIZE,
    ))

    # f32 MXU-operand path: bit-exact reassociation vs the reference.
    prepped_f32 = prepare_params(
        params, time_depth=TIME_DEPTH, compression_factor=COMPRESSION_FACTOR,
        compute_dtype=jnp.float32)
    out_f32 = jax.block_until_ready(fwd(x, prepped_f32))
    assert out_f32.shape == (B, OUTPUT_SIZE)
    err_f32 = float(jnp.max(jnp.abs(out_f32 - ref)))
    assert jnp.allclose(out_f32, ref, atol=1e-4, rtol=1e-4), err_f32

    # bf16 MXU-operand path (default for production): f32 accumulate,
    # operand rounding only -> looser tolerance.
    prepped_bf16 = prepare_params(
        params, time_depth=TIME_DEPTH, compression_factor=COMPRESSION_FACTOR)
    out_bf16 = jax.block_until_ready(fwd(x, prepped_bf16))
    assert out_bf16.shape == (B, OUTPUT_SIZE)
    err_bf16 = float(jnp.max(jnp.abs(out_bf16 - ref)))
    assert jnp.allclose(out_bf16, ref, atol=5e-2, rtol=5e-2), err_bf16

    print("KERNEL_OK")
</pallas_src>

<mosaic_0001>
module attributes {stable_mosaic.version = 11 : i64} {
  func.func @_recursive_time_kernel(%arg0: i32, %arg1: memref<8x128xf32, #tpu.memory_space<vmem>>, %arg2: memref<128x128xf32, #tpu.memory_space<vmem>>, %arg3: memref<1x128xf32, #tpu.memory_space<vmem>>, %arg4: memref<9x128x128xf32, #tpu.memory_space<vmem>>, %arg5: memref<9x1x128xf32, #tpu.memory_space<vmem>>, %arg6: memref<128x128xf32, #tpu.memory_space<vmem>>, %arg7: memref<1x128xf32, #tpu.memory_space<vmem>>, %arg8: memref<8x128xf32, #tpu.memory_space<vmem>>) attributes {dimension_semantics = [#tpu.dimension_semantics<parallel>], iteration_bounds = array<i64: 1>, scalar_prefetch = 0 : i64, scratch_operands = 0 : i64, tpu.core_type = #tpu.core_type<tc>, window_params = [{transform_indices = @transform_0, window_bounds = array<i64: 8, 128>}, {pipeline_mode = #tpu.pipeline_mode<synchronous>, transform_indices = @transform_1, window_bounds = array<i64: 128, 128>}, {pipeline_mode = #tpu.pipeline_mode<synchronous>, transform_indices = @transform_2, window_bounds = array<i64: 1, 128>}, {pipeline_mode = #tpu.pipeline_mode<synchronous>, transform_indices = @transform_3, window_bounds = array<i64: 9, 128, 128>}, {pipeline_mode = #tpu.pipeline_mode<synchronous>, transform_indices = @transform_4, window_bounds = array<i64: 9, 1, 128>}, {pipeline_mode = #tpu.pipeline_mode<synchronous>, transform_indices = @transform_5, window_bounds = array<i64: 128, 128>}, {pipeline_mode = #tpu.pipeline_mode<synchronous>, transform_indices = @transform_6, window_bounds = array<i64: 1, 128>}, {transform_indices = @transform_7, window_bounds = array<i64: 8, 128>}]} {
    %c0 = arith.constant 0 : index
    %c0_0 = arith.constant 0 : index
    %0 = vector.load %arg2[%c0, %c0_0] : memref<128x128xf32, #tpu.memory_space<vmem>>, vector<128x128xf32>
    %c0_1 = arith.constant 0 : index
    %c0_2 = arith.constant 0 : index
    %1 = vector.load %arg3[%c0_1, %c0_2] : memref<1x128xf32, #tpu.memory_space<vmem>>, vector<1x128xf32>
    %c0_3 = arith.constant 0 : index
    %c0_4 = arith.constant 0 : index
    %2 = vector.load %arg6[%c0_3, %c0_4] : memref<128x128xf32, #tpu.memory_space<vmem>>, vector<128x128xf32>
    %c0_5 = arith.constant 0 : index
    %c0_6 = arith.constant 0 : index
    %3 = vector.load %arg7[%c0_5, %c0_6] : memref<1x128xf32, #tpu.memory_space<vmem>>, vector<1x128xf32>
    %c0_7 = arith.constant 0 : index
    %c0_8 = arith.constant 0 : index
    %4 = vector.load %arg1[%c0_7, %c0_8] : memref<8x128xf32, #tpu.memory_space<vmem>>, vector<8x128xf32>
    %cst = arith.constant dense<0.000000e+00> : vector<8x128xf32>
    %5 = tpu.matmul %4, %0, %cst {dimension_numbers = #tpu.dot_dimension_numbers<[1], [0], [0], [1], [0, 0, 1, 1], [], []>} : vector<8x128xf32>, vector<128x128xf32>, vector<8x128xf32> -> vector<8x128xf32>
    %6 = vector.broadcast %1 : vector<1x128xf32> to vector<8x128xf32>
    %7 = arith.addf %5, %6 : vector<8x128xf32>
    %8 = math.tanh %7 : vector<8x128xf32>
    %c0_9 = arith.constant 0 : index
    %c0_10 = arith.constant 0 : index
    %c0_11 = arith.constant 0 : index
    %9 = vector.load %arg4[%c0_9, %c0_10, %c0_11] : memref<9x128x128xf32, #tpu.memory_space<vmem>>, vector<1x128x128xf32>
    %10 = vector.shape_cast %9 : vector<1x128x128xf32> to vector<128x128xf32>
    %c0_12 = arith.constant 0 : index
    %c0_13 = arith.constant 0 : index
    %c0_14 = arith.constant 0 : index
    %11 = vector.load %arg5[%c0_12, %c0_13, %c0_14] : memref<9x1x128xf32, #tpu.memory_space<vmem>>, vector<1x1x128xf32>
    %12 = vector.shape_cast %11 : vector<1x1x128xf32> to vector<1x128xf32>
    %cst_15 = arith.constant dense<0.000000e+00> : vector<8x128xf32>
    %13 = tpu.matmul %8, %10, %cst_15 {dimension_numbers = #tpu.dot_dimension_numbers<[1], [0], [0], [1], [0, 0, 1, 1], [], []>} : vector<8x128xf32>, vector<128x128xf32>, vector<8x128xf32> -> vector<8x128xf32>
    %14 = vector.broadcast %12 : vector<1x128xf32> to vector<8x128xf32>
    %15 = arith.addf %13, %14 : vector<8x128xf32>
    %16 = math.tanh %15 : vector<8x128xf32>
    %c1 = arith.constant 1 : index
    %c0_16 = arith.constant 0 : index
    %c0_17 = arith.constant 0 : index
    %17 = vector.load %arg4[%c1, %c0_16, %c0_17] : memref<9x128x128xf32, #tpu.memory_space<vmem>>, vector<1x128x128xf32>
    %18 = vector.shape_cast %17 : vector<1x128x128xf32> to vector<128x128xf32>
    %c1_18 = arith.constant 1 : index
    %c0_19 = arith.constant 0 : index
    %c0_20 = arith.constant 0 : index
    %19 = vector.load %arg5[%c1_18, %c0_19, %c0_20] : memref<9x1x128xf32, #tpu.memory_space<vmem>>, vector<1x1x128xf32>
    %20 = vector.shape_cast %19 : vector<1x1x128xf32> to vector<1x128xf32>
    %cst_21 = arith.constant dense<0.000000e+00> : vector<8x128xf32>
    %21 = tpu.matmul %16, %18, %cst_21 {dimension_numbers = #tpu.dot_dimension_numbers<[1], [0], [0], [1], [0, 0, 1, 1], [], []>} : vector<8x128xf32>, vector<128x128xf32>, vector<8x128xf32> -> vector<8x128xf32>
    %22 = vector.broadcast %20 : vector<1x128xf32> to vector<8x128xf32>
    %23 = arith.addf %21, %22 : vector<8x128xf32>
    %24 = math.tanh %23 : vector<8x128xf32>
    %c2 = arith.constant 2 : index
    %c0_22 = arith.constant 0 : index
    %c0_23 = arith.constant 0 : index
    %25 = vector.load %arg4[%c2, %c0_22, %c0_23] : memref<9x128x128xf32, #tpu.memory_space<vmem>>, vector<1x128x128xf32>
    %26 = vector.shape_cast %25 : vector<1x128x128xf32> to vector<128x128xf32>
    %c2_24 = arith.constant 2 : index
    %c0_25 = arith.constant 0 : index
    %c0_26 = arith.constant 0 : index
    %27 = vector.load %arg5[%c2_24, %c0_25, %c0_26] : memref<9x1x128xf32, #tpu.memory_space<vmem>>, vector<1x1x128xf32>
    %28 = vector.shape_cast %27 : vector<1x1x128xf32> to vector<1x128xf32>
    %cst_27 = arith.constant dense<0.000000e+00> : vector<8x128xf32>
    %29 = tpu.matmul %24, %26, %cst_27 {dimension_numbers = #tpu.dot_dimension_numbers<[1], [0], [0], [1], [0, 0, 1, 1], [], []>} : vector<8x128xf32>, vector<128x128xf32>, vector<8x128xf32> -> vector<8x128xf32>
    %30 = vector.broadcast %28 : vector<1x128xf32> to vector<8x128xf32>
    %31 = arith.addf %29, %30 : vector<8x128xf32>
    %32 = math.tanh %31 : vector<8x128xf32>
    %c3 = arith.constant 3 : index
    %c0_28 = arith.constant 0 : index
    %c0_29 = arith.constant 0 : index
    %33 = vector.load %arg4[%c3, %c0_28, %c0_29] : memref<9x128x128xf32, #tpu.memory_space<vmem>>, vector<1x128x128xf32>
    %34 = vector.shape_cast %33 : vector<1x128x128xf32> to vector<128x128xf32>
    %c3_30 = arith.constant 3 : index
    %c0_31 = arith.constant 0 : index
    %c0_32 = arith.constant 0 : index
    %35 = vector.load %arg5[%c3_30, %c0_31, %c0_32] : memref<9x1x128xf32, #tpu.memory_space<vmem>>, vector<1x1x128xf32>
    %36 = vector.shape_cast %35 : vector<1x1x128xf32> to vector<1x128xf32>
    %cst_33 = arith.constant dense<0.000000e+00> : vector<8x128xf32>
    %37 = tpu.matmul %32, %34, %cst_33 {dimension_numbers = #tpu.dot_dimension_numbers<[1], [0], [0], [1], [0, 0, 1, 1], [], []>} : vector<8x128xf32>, vector<128x128xf32>, vector<8x128xf32> -> vector<8x128xf32>
    %38 = vector.broadcast %36 : vector<1x128xf32> to vector<8x128xf32>
    %39 = arith.addf %37, %38 : vector<8x128xf32>
    %40 = math.tanh %39 : vector<8x128xf32>
    %c4 = arith.constant 4 : index
    %c0_34 = arith.constant 0 : index
    %c0_35 = arith.constant 0 : index
    %41 = vector.load %arg4[%c4, %c0_34, %c0_35] : memref<9x128x128xf32, #tpu.memory_space<vmem>>, vector<1x128x128xf32>
    %42 = vector.shape_cast %41 : vector<1x128x128xf32> to vector<128x128xf32>
    %c4_36 = arith.constant 4 : index
    %c0_37 = arith.constant 0 : index
    %c0_38 = arith.constant 0 : index
    %43 = vector.load %arg5[%c4_36, %c0_37, %c0_38] : memref<9x1x128xf32, #tpu.memory_space<vmem>>, vector<1x1x128xf32>
    %44 = vector.shape_cast %43 : vector<1x1x128xf32> to vector<1x128xf32>
    %cst_39 = arith.constant dense<0.000000e+00> : vector<8x128xf32>
    %45 = tpu.matmul %40, %42, %cst_39 {dimension_numbers = #tpu.dot_dimension_numbers<[1], [0], [0], [1], [0, 0, 1, 1], [], []>} : vector<8x128xf32>, vector<128x128xf32>, vector<8x128xf32> -> vector<8x128xf32>
    %46 = vector.broadcast %44 : vector<1x128xf32> to vector<8x128xf32>
    %47 = arith.addf %45, %46 : vector<8x128xf32>
    %48 = math.tanh %47 : vector<8x128xf32>
    %c5 = arith.constant 5 : index
    %c0_40 = arith.constant 0 : index
    %c0_41 = arith.constant 0 : index
    %49 = vector.load %arg4[%c5, %c0_40, %c0_41] : memref<9x128x128xf32, #tpu.memory_space<vmem>>, vector<1x128x128xf32>
    %50 = vector.shape_cast %49 : vector<1x128x128xf32> to vector<128x128xf32>
    %c5_42 = arith.constant 5 : index
    %c0_43 = arith.constant 0 : index
    %c0_44 = arith.constant 0 : index
    %51 = vector.load %arg5[%c5_42, %c0_43, %c0_44] : memref<9x1x128xf32, #tpu.memory_space<vmem>>, vector<1x1x128xf32>
    %52 = vector.shape_cast %51 : vector<1x1x128xf32> to vector<1x128xf32>
    %cst_45 = arith.constant dense<0.000000e+00> : vector<8x128xf32>
    %53 = tpu.matmul %48, %50, %cst_45 {dimension_numbers = #tpu.dot_dimension_numbers<[1], [0], [0], [1], [0, 0, 1, 1], [], []>} : vector<8x128xf32>, vector<128x128xf32>, vector<8x128xf32> -> vector<8x128xf32>
    %54 = vector.broadcast %52 : vector<1x128xf32> to vector<8x128xf32>
    %55 = arith.addf %53, %54 : vector<8x128xf32>
    %56 = math.tanh %55 : vector<8x128xf32>
    %c6 = arith.constant 6 : index
    %c0_46 = arith.constant 0 : index
    %c0_47 = arith.constant 0 : index
    %57 = vector.load %arg4[%c6, %c0_46, %c0_47] : memref<9x128x128xf32, #tpu.memory_space<vmem>>, vector<1x128x128xf32>
    %58 = vector.shape_cast %57 : vector<1x128x128xf32> to vector<128x128xf32>
    %c6_48 = arith.constant 6 : index
    %c0_49 = arith.constant 0 : index
    %c0_50 = arith.constant 0 : index
    %59 = vector.load %arg5[%c6_48, %c0_49, %c0_50] : memref<9x1x128xf32, #tpu.memory_space<vmem>>, vector<1x1x128xf32>
    %60 = vector.shape_cast %59 : vector<1x1x128xf32> to vector<1x128xf32>
    %cst_51 = arith.constant dense<0.000000e+00> : vector<8x128xf32>
    %61 = tpu.matmul %56, %58, %cst_51 {dimension_numbers = #tpu.dot_dimension_numbers<[1], [0], [0], [1], [0, 0, 1, 1], [], []>} : vector<8x128xf32>, vector<128x128xf32>, vector<8x128xf32> -> vector<8x128xf32>
    %62 = vector.broadcast %60 : vector<1x128xf32> to vector<8x128xf32>
    %63 = arith.addf %61, %62 : vector<8x128xf32>
    %64 = math.tanh %63 : vector<8x128xf32>
    %c7 = arith.constant 7 : index
    %c0_52 = arith.constant 0 : index
    %c0_53 = arith.constant 0 : index
    %65 = vector.load %arg4[%c7, %c0_52, %c0_53] : memref<9x128x128xf32, #tpu.memory_space<vmem>>, vector<1x128x128xf32>
    %66 = vector.shape_cast %65 : vector<1x128x128xf32> to vector<128x128xf32>
    %c7_54 = arith.constant 7 : index
    %c0_55 = arith.constant 0 : index
    %c0_56 = arith.constant 0 : index
    %67 = vector.load %arg5[%c7_54, %c0_55, %c0_56] : memref<9x1x128xf32, #tpu.memory_space<vmem>>, vector<1x1x128xf32>
    %68 = vector.shape_cast %67 : vector<1x1x128xf32> to vector<1x128xf32>
    %cst_57 = arith.constant dense<0.000000e+00> : vector<8x128xf32>
    %69 = tpu.matmul %64, %66, %cst_57 {dimension_numbers = #tpu.dot_dimension_numbers<[1], [0], [0], [1], [0, 0, 1, 1], [], []>} : vector<8x128xf32>, vector<128x128xf32>, vector<8x128xf32> -> vector<8x128xf32>
    %70 = vector.broadcast %68 : vector<1x128xf32> to vector<8x128xf32>
    %71 = arith.addf %69, %70 : vector<8x128xf32>
    %72 = math.tanh %71 : vector<8x128xf32>
    %c8 = arith.constant 8 : index
    %c0_58 = arith.constant 0 : index
    %c0_59 = arith.constant 0 : index
    %73 = vector.load %arg4[%c8, %c0_58, %c0_59] : memref<9x128x128xf32, #tpu.memory_space<vmem>>, vector<1x128x128xf32>
    %74 = vector.shape_cast %73 : vector<1x128x128xf32> to vector<128x128xf32>
    %c8_60 = arith.constant 8 : index
    %c0_61 = arith.constant 0 : index
    %c0_62 = arith.constant 0 : index
    %75 = vector.load %arg5[%c8_60, %c0_61, %c0_62] : memref<9x1x128xf32, #tpu.memory_space<vmem>>, vector<1x1x128xf32>
    %76 = vector.shape_cast %75 : vector<1x1x128xf32> to vector<1x128xf32>
    %cst_63 = arith.constant dense<0.000000e+00> : vector<8x128xf32>
    %77 = tpu.matmul %72, %74, %cst_63 {dimension_numbers = #tpu.dot_dimension_numbers<[1], [0], [0], [1], [0, 0, 1, 1], [], []>} : vector<8x128xf32>, vector<128x128xf32>, vector<8x128xf32> -> vector<8x128xf32>
    %78 = vector.broadcast %76 : vector<1x128xf32> to vector<8x128xf32>
    %79 = arith.addf %77, %78 : vector<8x128xf32>
    %80 = math.tanh %79 : vector<8x128xf32>
    %cst_64 = arith.constant dense<0.000000e+00> : vector<8x128xf32>
    %81 = tpu.matmul %80, %2, %cst_64 {dimension_numbers = #tpu.dot_dimension_numbers<[1], [0], [0], [1], [0, 0, 1, 1], [], []>} : vector<8x128xf32>, vector<128x128xf32>, vector<8x128xf32> -> vector<8x128xf32>
    %82 = vector.broadcast %3 : vector<1x128xf32> to vector<8x128xf32>
    %83 = arith.addf %81, %82 : vector<8x128xf32>
    %c0_65 = arith.constant 0 : index
    %c0_66 = arith.constant 0 : index
    %84 = vector.load %arg8[%c0_65, %c0_66] : memref<8x128xf32, #tpu.memory_space<vmem>>, vector<8x128xf32>
    tpu.vector_store %arg8[%c0_65, %c0_66], %83 {strides = array<i32>} : memref<8x128xf32, #tpu.memory_space<vmem>>, vector<8x128xf32>,
    return
  }
  func.func @transform_0(%arg0: i32) -> (i32, i32) {
    %c0_i32 = arith.constant 0 : i32
    %c0_i32_0 = arith.constant 0 : i32
    return %arg0, %c0_i32 : i32, i32
  }
  func.func @transform_1(%arg0: i32) -> (i32, i32) {
    %c0_i32 = arith.constant 0 : i32
    %c0_i32_0 = arith.constant 0 : i32
    %c0_i32_1 = arith.constant 0 : i32
    return %c0_i32, %c0_i32_0 : i32, i32
  }
  func.func @transform_2(%arg0: i32) -> (i32, i32) {
    %c0_i32 = arith.constant 0 : i32
    %c0_i32_0 = arith.constant 0 : i32
    %c0_i32_1 = arith.constant 0 : i32
    return %c0_i32, %c0_i32_0 : i32, i32
  }
  func.func @transform_3(%arg0: i32) -> (i32, i32, i32) {
    %c0_i32 = arith.constant 0 : i32
    %c0_i32_0 = arith.constant 0 : i32
    %c0_i32_1 = arith.constant 0 : i32
    %c0_i32_2 = arith.constant 0 : i32
    return %c0_i32, %c0_i32_0, %c0_i32_1 : i32, i32, i32
  }
  func.func @transform_4(%arg0: i32) -> (i32, i32, i32) {
    %c0_i32 = arith.constant 0 : i32
    %c0_i32_0 = arith.constant 0 : i32
    %c0_i32_1 = arith.constant 0 : i32
    %c0_i32_2 = arith.constant 0 : i32
    return %c0_i32, %c0_i32_0, %c0_i32_1 : i32, i32, i32
  }
  func.func @transform_5(%arg0: i32) -> (i32, i32) {
    %c0_i32 = arith.constant 0 : i32
    %c0_i32_0 = arith.constant 0 : i32
    %c0_i32_1 = arith.constant 0 : i32
    return %c0_i32, %c0_i32_0 : i32, i32
  }
  func.func @transform_6(%arg0: i32) -> (i32, i32) {
    %c0_i32 = arith.constant 0 : i32
    %c0_i32_0 = arith.constant 0 : i32
    %c0_i32_1 = arith.constant 0 : i32
    return %c0_i32, %c0_i32_0 : i32, i32
  }
  func.func @transform_7(%arg0: i32) -> (i32, i32) {
    %c0_i32 = arith.constant 0 : i32
    %c0_i32_0 = arith.constant 0 : i32
    return %arg0, %c0_i32 : i32, i32
  }
}

</mosaic_0001>

<bundles_post_ra>
// kernel: cu_recursive_time_forward.1
= control target key start
LH: loop header
LB: loop body
LE: loop exit
PB: predicated region body
PF: predicated region fallthrough
CT: control target
= control target key end

     0   :  { %12 = vsyncpa [#allocation3], 0  ;;  %s2326_s0 = inlined_call_operand.vmem [shape: f32[8,128], index: 0, kind: input, shape index: {}]   ;;  %s2327_s1 = inlined_call_operand.hbm [shape: f32[128,128], index: 1, kind: input, shape index: {}]   ;;  %s2328_s2 = inlined_call_operand.vmem [shape: f32[1,128], index: 2, kind: input, shape index: {}]   ;;  %s2329_s3 = inlined_call_operand.hbm [shape: f32[9,128,128], index: 3, kind: input, shape index: {}]   ;;  %s2330_s4 = inlined_call_operand.vmem [shape: f32[9,1,128], index: 4, kind: input, shape index: {}]   ;;  %s2331_s5 = inlined_call_operand.hbm [shape: f32[128,128], index: 5, kind: input, shape index: {}]   ;;  %s2332_s6 = inlined_call_operand.vmem [shape: f32[1,128], index: 6, kind: input, shape index: {}]   ;;  %s2333_s7 = inlined_call_operand.vmem [shape: f32[8,128], index: 7, kind: output, shape index: {}]  }
   0x1   :  { %13 = vsyncpa [#allocation5], 0  ;;  %s2077_s24 = smov [#allocation4]   ;;  %s2078_s26 = smov [#allocation2]  }
   0x2   :  { %s35_s25 = sshll.u32 %s2077_s24, 4  ;;  %s21_s27 = sshll.u32 %s2078_s26, 4  ;;  %s36_s25 = int_to_ptr.vmem [resolvable:$true] %s35_s25  ;;  %s2125_s27 = int_to_ptr.vmem [resolvable:$true] %s21_s27 }
   0x3   :  { %s2007_s30 = scalar_lea.hbm %s2329_s3, 18432 }
   0x4   :  { %p2008_p0 = scmp.ne.s32.totalorder %s2329_s3, %s2007_s30  ;;  %p2011_p1 = scmp.lt.u32.totalorder %s2007_s30, %s2329_s3 }
   0x6   :  { %p2013_p2 = pnand %p2011_p1, %p2008_p0 }
   0x8   :  { %2016 = shalt.err (!%p2013_p2)
}
   0x9   :  { %s2017_s12 = scalar_lea.vmem %s36_s25, 18432  ;;  %p2022_p4 = scmp.lt.s32.totalorder %s36_s25, %s36_s25 }
   0xa   :  { %p2018_p3 = scmp.ne.s32.totalorder %s36_s25, %s2017_s12  ;;  %p2023_p5 = scmp.lt.s32.totalorder %s2017_s12, %s2017_s12 }
   0xc   :  { %p2024_p6 = por %p2023_p5, %p2022_p4 }
   0xe   :  { %p2025_p7 = pnand %p2024_p6, %p2018_p3 }
  0x10   :  { %2028 = shalt.err (!%p2025_p7)
}
  0x11   :  { %s2079_s13 = smov 128   ;;  %s2080_s14 = smov 8  }
  0x12   :  { %41 = dma.hbm_to_vmem [thread:$0]  %s2329_s3, 18432, %s36_s25, [#allocation5], %s2079_s13, %s2079_s13, %s2080_s14  }
  0x13   :  { %s2029_s19 = scalar_lea.hbm %s2327_s1, 2048 }
  0x14   :  { %p2030_p8 = scmp.ne.s32.totalorder %s2327_s1, %s2029_s19  ;;  %p2033_p9 = scmp.lt.u32.totalorder %s2029_s19, %s2327_s1 }
  0x16   :  { %p2035_p10 = pnand %p2033_p9, %p2030_p8 }
  0x18   :  { %2038 = shalt.err (!%p2035_p10)
}
  0x19   :  { %s2039_s24 = scalar_lea.vmem %s2125_s27, 2048  ;;  %p2044_p12 = scmp.lt.s32.totalorder %s2125_s27, %s2125_s27 }
  0x1a   :  { %p2040_p11 = scmp.ne.s32.totalorder %s2125_s27, %s2039_s24  ;;  %p2045_p13 = scmp.lt.s32.totalorder %s2039_s24, %s2039_s24 }
  0x1c   :  { %p2046_p0 = por %p2045_p13, %p2044_p12 }
  0x1e   :  { %p2047_p1 = pnand %p2046_p0, %p2040_p11 }
  0x20   :  { %2050 = shalt.err (!%p2047_p1)
}
  0x21   :  { %27 = dma.hbm_to_vmem [thread:$0]  %s2327_s1, 2048, %s2125_s27, [#allocation3], %s2079_s13, %s2079_s13, %s2080_s14  }
  0x22   :  { %s2081_s26 = smov [#allocation6]   ;;  %s2051_s8 = scalar_lea.hbm %s2331_s5, 2048 }
  0x23   :  { %s49_s28 = sshll.u32 %s2081_s26, 4  ;;  %p2052_p2 = scmp.ne.s32.totalorder %s2331_s5, %s2051_s8  ;;  %s50_s28 = int_to_ptr.vmem [resolvable:$true] %s49_s28 }
  0x24   :  { %p2055_p3 = scmp.lt.u32.totalorder %s2051_s8, %s2331_s5 }
  0x26   :  { %p2057_p4 = pnand %p2055_p3, %p2052_p2 }
  0x28   :  { %2060 = shalt.err (!%p2057_p4)
}
  0x29   :  { %s2061_s15 = scalar_lea.vmem %s50_s28, 2048  ;;  %p2066_p6 = scmp.lt.s32.totalorder %s50_s28, %s50_s28 }
  0x2a   :  { %p2062_p5 = scmp.ne.s32.totalorder %s50_s28, %s2061_s15  ;;  %p2067_p7 = scmp.lt.s32.totalorder %s2061_s15, %s2061_s15 }
  0x2c   :  { %p2068_p8 = por %p2067_p7, %p2066_p6 }
  0x2e   :  { %p2069_p9 = pnand %p2068_p8, %p2062_p5 }
  0x30   :  { %2072 = shalt.err (!%p2069_p9)
}
  0x31   :  { %55 = dma.hbm_to_vmem [thread:$0]  %s2331_s5, 2048, %s50_s28, [#allocation5], %s2079_s13, %s2079_s13, %s2080_s14  }
  0x32   :  { %2073 = dma.done.wait [#allocation3], 2048  }
  0x33   :  { %2074 = vsyncadd [#allocation3], 4294965248 }
  0x34   :  { %2075 = dma.done.wait [#allocation5], 20480  }
  0x35   :  { %2076 = vsyncadd [#allocation5], 4294946816  ;;  %v2082_v0 = vmov 0.0|0.0   ;;  %vm2083_vm0 = vmmov 0   ;;  %v2084_v1 = vmov 0.0   ;;  %v67_v2 = vld [vmem:[#allocation2] sm:$0xff] }
  0x36   :  { %1715 = vmatprep.subr.bf16.mxu0 %v2082_v0  ;;  %1362 = vmatprep.mubr.msk.f32.mxu0 %vm2083_vm0, %v2084_v1  ;;  %v68_v3 = vld [vmem:[#allocation2 + $0x8] sm:$0xff]  ;;  %v69_v4 = vld [vmem:[#allocation2 + $0x10] sm:$0xff]  ;;  %v70_v6 = vld [vmem:[#allocation2 + $0x18] sm:$0xff] }
  0x37   :  { %1739 = vmatprep.subr.bf16.mxu1 %v2082_v0  ;;  %1397 = vmatprep.mubr.msk.f32.mxu1 %vm2083_vm0, %v2084_v1  ;;  %v1716_v5 = vpack.c.bf16 %v68_v3, %v67_v2  ;;  %v1719_v7 = vpack.c.bf16 %v70_v6, %v69_v4  ;;  %v71_v8 = vld [vmem:[#allocation2 + $0x20] sm:$0xff]  ;;  %v72_v9 = vld [vmem:[#allocation2 + $0x28] sm:$0xff]  ;;  %v181_v12 = vld [vmem:[#allocation4 + $0x10] sm:$0xff] }
  0x38   :  { %v179_v10 = vld [vmem:[#allocation4] sm:$0xff]  ;;  %v180_v11 = vld [vmem:[#allocation4 + $0x8] sm:$0xff]  ;;  %v182_v13 = vld [vmem:[#allocation4 + $0x18] sm:$0xff]  ;;  %v1722_v14 = vpack.c.bf16 %v72_v9, %v71_v8 }
  0x39   :  { %1717 = vmatpush3.bf16.msra.mxu0 %v1716_v5  ;;  %v1740_v15 = vpack.c.bf16 %v180_v11, %v179_v10  ;;  %v73_v16 = vld [vmem:[#allocation2 + $0x30] sm:$0xff]  ;;  %v74_v17 = vld [vmem:[#allocation2 + $0x38] sm:$0xff]  ;;  %v1743_v18 = vpack.c.bf16 %v182_v13, %v181_v12  ;;  %v183_v19 = vld [vmem:[#allocation4 + $0x20] sm:$0xff] }
  0x3a   :  { %1718 = vmatprep.subr.bf16.mxu0 %v2082_v0  ;;  %v184_v20 = vld [vmem:[#allocation4 + $0x28] sm:$0xff]  ;;  %v1725_v21 = vpack.c.bf16 %v74_v17, %v73_v16  ;;  %v75_v22 = vld [vmem:[#allocation2 + $0x40] sm:$0xff]  ;;  %v185_v25 = vld [vmem:[#allocation4 + $0x30] sm:$0xff] }
  0x3b   :  { %1741 = vmatpush3.bf16.msra.mxu1 %v1740_v15  ;;  %v76_v23 = vld [vmem:[#allocation2 + $0x48] sm:$0xff]  ;;  %v1746_v24 = vpack.c.bf16 %v184_v20, %v183_v19  ;;  %v186_v26 = vld [vmem:[#allocation4 + $0x38] sm:$0xff]  ;;  %v77_v28 = vld [vmem:[#allocation2 + $0x50] sm:$0xff] }
  0x3c   :  { %1742 = vmatprep.subr.bf16.mxu1 %v2082_v0  ;;  %v1728_v27 = vpack.c.bf16 %v76_v23, %v75_v22  ;;  %v78_v29 = vld [vmem:[#allocation2 + $0x58] sm:$0xff]  ;;  %v1749_v30 = vpack.c.bf16 %v186_v26, %v185_v25  ;;  %v187_v31 = vld [vmem:[#allocation4 + $0x40] sm:$0xff]  ;;  %v188_v32 = vld [vmem:[#allocation4 + $0x48] sm:$0xff] }
  0x3d   :  { %1720 = vmatpush3.bf16.msra.mxu0 %v1719_v7  ;;  %v1731_v33 = vpack.c.bf16 %v78_v29, %v77_v28  ;;  %v79_v34 = vld [vmem:[#allocation2 + $0x60] sm:$0xff]  ;;  %v80_v35 = vld [vmem:[#allocation2 + $0x68] sm:$0xff]  ;;  %v1752_v36 = vpack.c.bf16 %v188_v32, %v187_v31  ;;  %v81_v38 = vld [vmem:[#allocation2 + $0x70] sm:$0xff] }
  0x3e   :  { %1721 = vmatprep.subr.bf16.mxu0 %v2082_v0  ;;  %v1734_v37 = vpack.c.bf16 %v80_v35, %v79_v34  ;;  %v82_v39 = vld [vmem:[#allocation2 + $0x78] sm:$0xff]  ;;  %v101_v41 = vld [vmem:[%s2326_s0] sm:$0xff]  ;;  %v191_v45 = vld [vmem:[#allocation4 + $0x60] sm:$0xff] }
  0x3f   :  { %1744 = vmatpush3.bf16.msra.mxu1 %v1743_v18  ;;  %v1737_v40 = vpack.c.bf16 %v82_v39, %v81_v38  ;;  %v189_v42 = vld [vmem:[#allocation4 + $0x50] sm:$0xff]  ;;  %v190_v43 = vld [vmem:[#allocation4 + $0x58] sm:$0xff]  ;;  %v192_v46 = vld [vmem:[#allocation4 + $0x68] sm:$0xff] }
  0x40   :  { %1745 = vmatprep.subr.bf16.mxu1 %v2082_v0  ;;  %v1755_v44 = vpack.c.bf16 %v190_v43, %v189_v42  ;;  %v1758_v47 = vpack.c.bf16 %v192_v46, %v191_v45  ;;  %v193_v48 = vld [vmem:[#allocation4 + $0x70] sm:$0xff]  ;;  %v194_v49 = vld [vmem:[#allocation4 + $0x78] sm:$0xff]  ;;  %v274_v51 = vld [vmem:[#allocation4 + $0x80] sm:$0xff] }
  0x41   :  { %1723 = vmatpush3.bf16.msra.mxu0 %v1722_v14  ;;  %v1761_v50 = vpack.c.bf16 %v194_v49, %v193_v48  ;;  %v275_v52 = vld [vmem:[#allocation4 + $0x88] sm:$0xff]  ;;  %v276_v53 = vld [vmem:[#allocation4 + $0x90] sm:$0xff]  ;;  %v277_v55 = vld [vmem:[#allocation4 + $0x98] sm:$0xff] }
  0x42   :  { %1724 = vmatprep.subr.bf16.mxu0 %v2082_v0  ;;  %v1764_v54 = vpack.c.bf16 %v275_v52, %v274_v51  ;;  %v1767_v56 = vpack.c.bf16 %v277_v55, %v276_v53  ;;  %v278_v57 = vld [vmem:[#allocation4 + $0xa0] sm:$0xff]  ;;  %v279_v58 = vld [vmem:[#allocation4 + $0xa8] sm:$0xff]  ;;  %v280_v60 = vld [vmem:[#allocation4 + $0xb0] sm:$0xff] }
  0x43   :  { %1747 = vmatpush3.bf16.msra.mxu1 %v1746_v24  ;;  %v1770_v59 = vpack.c.bf16 %v279_v58, %v278_v57  ;;  %v281_v61 = vld [vmem:[#allocation4 + $0xb8] sm:$0xff]  ;;  %v282_v63 = vld [vmem:[#allocation4 + $0xc0] sm:$0xff]  ;;  %v283_v2 = vld [vmem:[#allocation4 + $0xc8] sm:$0xff] }
  0x44   :  { %1748 = vmatprep.subr.bf16.mxu1 %v2082_v0  ;;  %v1773_v62 = vpack.c.bf16 %v281_v61, %v280_v60  ;;  %v1776_v3 = vpack.c.bf16 %v283_v2, %v282_v63  ;;  %v1124_v4 = vld [vmem:[%s2328_s2] ss:$0 sm:$0xff]  ;;  %v285_v10 = vld [vmem:[#allocation4 + $0xd8] sm:$0xff]  ;;  %v286_v12 = vld [vmem:[#allocation4 + $0xe0] sm:$0xff] }
  0x45   :  { %1726 = vmatpush3.bf16.msra.mxu0 %v1725_v21  ;;  %v284_v9 = vld [vmem:[#allocation4 + $0xd0] sm:$0xff]  ;;  %v287_v13 = vld [vmem:[#allocation4 + $0xe8] sm:$0xff]  ;;  %v289_v16 = vld [vmem:[#allocation4 + $0xf8] sm:$0xff] }
  0x46   :  { %1727 = vmatprep.subr.bf16.mxu0 %v2082_v0  ;;  %v1779_v11 = vpack.c.bf16 %v285_v10, %v284_v9  ;;  %v1782_v14 = vpack.c.bf16 %v287_v13, %v286_v12  ;;  %v288_v15 = vld [vmem:[#allocation4 + $0xf0] sm:$0xff]  ;;  %v370_v18 = vld [vmem:[#allocation4 + $0x100] sm:$0xff]  ;;  %v371_v19 = vld [vmem:[#allocation4 + $0x108] sm:$0xff] }
  0x47   :  { %1750 = vmatpush3.bf16.msra.mxu1 %v1749_v30  ;;  %v1785_v17 = vpack.c.bf16 %v289_v16, %v288_v15  ;;  %v372_v20 = vld [vmem:[#allocation4 + $0x110] sm:$0xff]  ;;  %v1788_v21 = vpack.c.bf16 %v371_v19, %v370_v18  ;;  %v373_v22 = vld [vmem:[#allocation4 + $0x118] sm:$0xff]  ;;  %v374_v24 = vld [vmem:[#allocation4 + $0x120] sm:$0xff] }
  0x48   :  { %1751 = vmatprep.subr.bf16.mxu1 %v2082_v0  ;;  %v1791_v23 = vpack.c.bf16 %v373_v22, %v372_v20  ;;  %v375_v25 = vld [vmem:[#allocation4 + $0x128] sm:$0xff]  ;;  %v377_v28 = vld [vmem:[#allocation4 + $0x138] sm:$0xff]  ;;  %v378_v30 = vld [vmem:[#allocation4 + $0x140] sm:$0xff] }
  0x49   :  { %1729 = vmatpush3.bf16.msra.mxu0 %v1728_v27  ;;  %v1794_v26 = vpack.c.bf16 %v375_v25, %v374_v24  ;;  %v376_v27 = vld [vmem:[#allocation4 + $0x130] sm:$0xff]  ;;  %v379_v31 = vld [vmem:[#allocation4 + $0x148] sm:$0xff]  ;;  %v381_v39 = vld [vmem:[#allocation4 + $0x158] sm:$0xff] }
  0x4a   :  { %1730 = vmatprep.subr.bf16.mxu0 %v2082_v0  ;;  %v1797_v29 = vpack.c.bf16 %v377_v28, %v376_v27  ;;  %v1800_v32 = vpack.c.bf16 %v379_v31, %v378_v30  ;;  %v380_v38 = vld [vmem:[#allocation4 + $0x150] sm:$0xff]  ;;  %v383_v42 = vld [vmem:[#allocation4 + $0x168] sm:$0xff]  ;;  %v385_v45 = vld [vmem:[#allocation4 + $0x178] sm:$0xff] }
  0x4b   :  { %1753 = vmatpush3.bf16.msra.mxu1 %v1752_v36  ;;  %v467_v48 = vld [vmem:[#allocation4 + $0x188] sm:$0xff]  ;;  %v468_v49 = vld [vmem:[#allocation4 + $0x190] sm:$0xff]  ;;  %v469_v51 = vld [vmem:[#allocation4 + $0x198] sm:$0xff] }
  0x4c   :  { %1754 = vmatprep.subr.bf16.mxu1 %v2082_v0  ;;  %v1815_v52 = vpack.c.bf16 %v469_v51, %v468_v49  ;;  %v470_v53 = vld [vmem:[#allocation4 + $0x1a0] sm:$0xff]  ;;  %v473_v57 = vld [vmem:[#allocation4 + $0x1b8] sm:$0xff]  ;;  %v475_v60 = vld [vmem:[#allocation4 + $0x1c8] sm:$0xff] }
  0x4d   :  { %1732 = vmatpush3.bf16.msra.mxu0 %v1731_v33  ;;  %v1125_v33 = vld [vmem:[%s2330_s4] ss:$0 sm:$0xff]  ;;  %v479_v9 = vld [vmem:[#allocation4 + $0x1e8] sm:$0xff]  ;;  %v481_v12 = vld [vmem:[#allocation4 + $0x1f8] sm:$0xff] }
  0x4e   :  { %1733 = vmatprep.subr.bf16.mxu0 %v2082_v0  ;;  %v563_v15 = vld [vmem:[#allocation4 + $0x208] sm:$0xff]  ;;  %v564_v16 = vld [vmem:[#allocation4 + $0x210] sm:$0xff]  ;;  %v565_v18 = vld [vmem:[#allocation4 + $0x218] sm:$0xff] }
  0x4f   :  { %1756 = vmatpush3.bf16.msra.mxu1 %v1755_v44  ;;  %v384_v44 = vld [vmem:[#allocation4 + $0x170] sm:$0xff]  ;;  %v1839_v19 = vpack.c.bf16 %v565_v18, %v564_v16  ;;  %v566_v20 = vld [vmem:[#allocation4 + $0x220] sm:$0xff]  ;;  %v569_v24 = vld [vmem:[#allocation4 + $0x238] sm:$0xff] }
  0x50   :  { %1757 = vmatprep.subr.bf16.mxu1 %v2082_v0  ;;  %v1809_v46 = vpack.c.bf16 %v385_v45, %v384_v44  ;;  %v571_v27 = vld [vmem:[#allocation4 + $0x248] sm:$0xff]  ;;  %v660_v45 = vld [vmem:[#allocation4 + $0x290] sm:$0xff]  ;;  %v662_v49 = vld [vmem:[#allocation4 + $0x2a0] sm:$0xff] }
  0x51   :  { %1735 = vmatpush3.bf16.msra.mxu0 %v1734_v37  ;;  %v659_v44 = vld [vmem:[#allocation4 + $0x288] sm:$0xff]  ;;  %v758_v16 = vld [vmem:[#allocation4 + $0x320] sm:$0xff] }
  0x52   :  { %1736 = vmatprep.subr.bf16.mxu0 %v2082_v0 }
  0x53   :  { %1759 = vmatpush3.bf16.msra.mxu1 %v1758_v47  ;;  %v466_v47 = vld [vmem:[#allocation4 + $0x180] sm:$0xff] }
  0x54   :  { %1760 = vmatprep.subr.bf16.mxu1 %v2082_v0 }
  0x55   :  { %1738 = vmatpush3.bf16.msra.mxu0 %v1737_v40  ;;  %v1803_v40 = vpack.c.bf16 %v381_v39, %v380_v38  ;;  %v575_v38 = vld [vmem:[#allocation4 + $0x268] sm:$0xff] }
  0x56   :  { %1763 = vmatprep.subr.bf16.mxu0 %v2082_v0 }
  0x57   :  { %1762 = vmatpush3.bf16.msra.mxu1 %v1761_v50  ;;  %v1812_v50 = vpack.c.bf16 %v467_v48, %v466_v47  ;;  %v661_v47 = vld [vmem:[#allocation4 + $0x298] sm:$0xff] }
  0x58   :  { %1363 = vmatmul.mubr.f32.vlgmr.msra.gmra.mrb[0].mxu0 %v101_v41  ;;  %1787 = vmatprep.subr.bf16.mxu1 %v2082_v0  ;;  %v382_v41 = vld [vmem:[#allocation4 + $0x160] sm:$0xff]  ;;  %v1863_v48 = vpack.c.bf16 %v661_v47, %v660_v45 }
  0x59   :  { %1432 = vmatprep.mubr.msk.f32.mxu0 %vm2083_vm0, %v2084_v1  ;;  %1765 = vmatpush3.bf16.msra.mxu0 %v1764_v54  ;;  %v1806_v43 = vpack.c.bf16 %v383_v42, %v382_v41  ;;  %v471_v54 = vld [vmem:[#allocation4 + $0x1a8] sm:$0xff]  ;;  %v577_v41 = vld [vmem:[#allocation4 + $0x278] sm:$0xff]  ;;  %v854_v45 = vld [vmem:[#allocation4 + $0x3a0] sm:$0xff] }
  0x5a   :  { %1766 = vmatprep.subr.bf16.mxu0 %v2082_v0  ;;  %v1818_v55 = vpack.c.bf16 %v471_v54, %v470_v53  ;;  %v665_v53 = vld [vmem:[#allocation4 + $0x2b8] sm:$0xff] }
  0x5d   :  { %1768 = vmatpush3.bf16.msra.mxu0 %v1767_v56  ;;  %v472_v56 = vld [vmem:[#allocation4 + $0x1b0] sm:$0xff] }
  0x5e   :  { %1769 = vmatprep.subr.bf16.mxu0 %v2082_v0  ;;  %v1821_v58 = vpack.c.bf16 %v473_v57, %v472_v56  ;;  %v667_v56 = vld [vmem:[#allocation4 + $0x2c8] sm:$0xff] }
  0x61   :  { %1771 = vmatpush3.bf16.msra.mxu0 %v1770_v59  ;;  %v474_v59 = vld [vmem:[#allocation4 + $0x1c0] sm:$0xff] }
  0x62   :  { %1772 = vmatprep.subr.bf16.mxu0 %v2082_v0  ;;  %v1824_v61 = vpack.c.bf16 %v475_v60, %v474_v59 }
  0x65   :  { %1774 = vmatpush3.bf16.msra.mxu0 %v1773_v62  ;;  %v1127_v62 = vld [vmem:[%s2330_s4 + $0x1] ss:$0 sm:$0xff] }
  0x66   :  { %1775 = vmatprep.subr.bf16.mxu0 %v2082_v0 }
  0x69   :  { %1777 = vmatpush3.bf16.msra.mxu0 %v1776_v3 }
  0x6a   :  { %1778 = vmatprep.subr.bf16.mxu0 %v2082_v0 }
  0x6d   :  { %1780 = vmatpush3.bf16.msra.mxu0 %v1779_v11  ;;  %v480_v11 = vld [vmem:[#allocation4 + $0x1f0] sm:$0xff] }
  0x6e   :  { %1781 = vmatprep.subr.bf16.mxu0 %v2082_v0  ;;  %v1833_v13 = vpack.c.bf16 %v481_v12, %v480_v11  ;;  %v755_v11 = vld [vmem:[#allocation4 + $0x308] sm:$0xff]  ;;  %v756_v12 = vld [vmem:[#allocation4 + $0x310] sm:$0xff] }
  0x71   :  { %1783 = vmatpush3.bf16.msra.mxu0 %v1782_v14  ;;  %v562_v14 = vld [vmem:[#allocation4 + $0x200] sm:$0xff] }
  0x72   :  { %1784 = vmatprep.subr.bf16.mxu0 %v2082_v0 }
  0x75   :  { %1786 = vmatpush3.bf16.msra.mxu0 %v1785_v17  ;;  %v1836_v17 = vpack.c.bf16 %v563_v15, %v562_v14  ;;  %v757_v14 = vld [vmem:[#allocation4 + $0x318] sm:$0xff] }
  0x76   :  { %1811 = vmatprep.subr.bf16.mxu0 %v2082_v0  ;;  %v1887_v15 = vpack.c.bf16 %v757_v14, %v756_v12  ;;  %v950_v12 = vld [vmem:[#allocation4 + $0x420] sm:$0xff] }
 0x12b   :  { %v174_v5 = vpop.f32.mrb[0].mxu0 }
 0x12c   :  { %v175_v6 = vadd.f32 %v1124_v4, %v174_v5  ;;  %v1364_v7 = vpop.f32.mrb[1].mxu0  ;;  %v476_v5 = vld [vmem:[#allocation4 + $0x1d0] sm:$0xff] }
 0x12e   :  { %1987 = vtanh.f32 %v175_v6  ;;  %v477_v6 = vld [vmem:[#allocation4 + $0x1d8] sm:$0xff] }
 0x12f   :  { %v1827_v7 = vpack.c.bf16 %v477_v6, %v476_v5  ;;  %v671_v5 = vld [vmem:[#allocation4 + $0x2e8] sm:$0xff] }
 0x138   :  { %v1988_v8 = vpop.eup %1987 }
 0x139   :  { %1398 = vmatmul.mubr.f32.vlgmr.msra.gmra.mrb[0].mxu1 %v1988_v8  ;;  %v478_v8 = vld [vmem:[#allocation4 + $0x1e0] sm:$0xff] }
 0x13a   :  { %1467 = vmatprep.mubr.msk.f32.mxu1 %vm2083_vm0, %v2084_v1  ;;  %1789 = vmatpush3.bf16.msra.mxu1 %v1788_v21  ;;  %v1830_v10 = vpack.c.bf16 %v479_v9, %v478_v8  ;;  %v567_v21 = vld [vmem:[#allocation4 + $0x228] sm:$0xff]  ;;  %v673_v8 = vld [vmem:[#allocation4 + $0x2f8] sm:$0xff] }
 0x13b   :  { %1790 = vmatprep.subr.bf16.mxu1 %v2082_v0  ;;  %v1842_v22 = vpack.c.bf16 %v567_v21, %v566_v20  ;;  %v761_v20 = vld [vmem:[#allocation4 + $0x338] sm:$0xff] }
 0x13e   :  { %1792 = vmatpush3.bf16.msra.mxu1 %v1791_v23  ;;  %v568_v23 = vld [vmem:[#allocation4 + $0x230] sm:$0xff] }
 0x13f   :  { %1793 = vmatprep.subr.bf16.mxu1 %v2082_v0  ;;  %v1845_v25 = vpack.c.bf16 %v569_v24, %v568_v23  ;;  %v763_v23 = vld [vmem:[#allocation4 + $0x348] sm:$0xff] }
 0x142   :  { %1795 = vmatpush3.bf16.msra.mxu1 %v1794_v26  ;;  %v570_v26 = vld [vmem:[#allocation4 + $0x240] sm:$0xff] }
 0x143   :  { %1796 = vmatprep.subr.bf16.mxu1 %v2082_v0  ;;  %v1848_v28 = vpack.c.bf16 %v571_v27, %v570_v26 }
 0x146   :  { %1798 = vmatpush3.bf16.msra.mxu1 %v1797_v29  ;;  %v1129_v29 = vld [vmem:[%s2330_s4 + $0x2] ss:$0 sm:$0xff] }
 0x147   :  { %1799 = vmatprep.subr.bf16.mxu1 %v2082_v0 }
 0x14a   :  { %1801 = vmatpush3.bf16.msra.mxu1 %v1800_v32 }
 0x14b   :  { %1802 = vmatprep.subr.bf16.mxu1 %v2082_v0 }
 0x14e   :  { %1804 = vmatpush3.bf16.msra.mxu1 %v1803_v40  ;;  %v576_v40 = vld [vmem:[#allocation4 + $0x270] sm:$0xff] }
 0x14f   :  { %1805 = vmatprep.subr.bf16.mxu1 %v2082_v0  ;;  %v1857_v42 = vpack.c.bf16 %v577_v41, %v576_v40  ;;  %v851_v40 = vld [vmem:[#allocation4 + $0x388] sm:$0xff]  ;;  %v852_v41 = vld [vmem:[#allocation4 + $0x390] sm:$0xff] }
 0x152   :  { %1807 = vmatpush3.bf16.msra.mxu1 %v1806_v43  ;;  %v658_v43 = vld [vmem:[#allocation4 + $0x280] sm:$0xff] }
 0x153   :  { %1808 = vmatprep.subr.bf16.mxu1 %v2082_v0 }
 0x156   :  { %1810 = vmatpush3.bf16.msra.mxu1 %v1809_v46  ;;  %v1860_v46 = vpack.c.bf16 %v659_v44, %v658_v43  ;;  %v853_v43 = vld [vmem:[#allocation4 + $0x398] sm:$0xff] }
 0x157   :  { %1835 = vmatprep.subr.bf16.mxu1 %v2082_v0  ;;  %v1911_v44 = vpack.c.bf16 %v853_v43, %v852_v41  ;;  %v89_v41 = vld [vmem:[#allocation6 + $0x28] sm:$0xff]  ;;  %v90_v43 = vld [vmem:[#allocation6 + $0x30] sm:$0xff] }
 0x20c   :  { %v268_v34 = vpop.f32.mrb[0].mxu1 }
 0x20d   :  { %v269_v35 = vadd.f32 %v1125_v33, %v268_v34  ;;  %v1399_v36 = vpop.f32.mrb[1].mxu1  ;;  %v572_v34 = vld [vmem:[#allocation4 + $0x250] sm:$0xff] }
 0x20f   :  { %1989 = vtanh.f32 %v269_v35  ;;  %v573_v35 = vld [vmem:[#allocation4 + $0x258] sm:$0xff] }
 0x210   :  { %v1851_v36 = vpack.c.bf16 %v573_v35, %v572_v34  ;;  %v767_v34 = vld [vmem:[#allocation4 + $0x368] sm:$0xff] }
 0x219   :  { %v1990_v37 = vpop.eup %1989 }
 0x21a   :  { %1433 = vmatmul.mubr.f32.vlgmr.msra.gmra.mrb[2].mxu0 %v1990_v37  ;;  %v574_v37 = vld [vmem:[#allocation4 + $0x260] sm:$0xff] }
 0x21b   :  { %1502 = vmatprep.mubr.msk.f32.mxu0 %vm2083_vm0, %v2084_v1  ;;  %1813 = vmatpush3.bf16.msra.mxu0 %v1812_v50  ;;  %v1854_v39 = vpack.c.bf16 %v575_v38, %v574_v37  ;;  %v663_v50 = vld [vmem:[#allocation4 + $0x2a8] sm:$0xff]  ;;  %v769_v37 = vld [vmem:[#allocation4 + $0x378] sm:$0xff] }
 0x21c   :  { %1814 = vmatprep.subr.bf16.mxu0 %v2082_v0  ;;  %v1866_v51 = vpack.c.bf16 %v663_v50, %v662_v49  ;;  %v857_v49 = vld [vmem:[#allocation4 + $0x3b8] sm:$0xff] }
 0x21f   :  { %1816 = vmatpush3.bf16.msra.mxu0 %v1815_v52  ;;  %v664_v52 = vld [vmem:[#allocation4 + $0x2b0] sm:$0xff] }
 0x220   :  { %1817 = vmatprep.subr.bf16.mxu0 %v2082_v0  ;;  %v1869_v54 = vpack.c.bf16 %v665_v53, %v664_v52  ;;  %v859_v52 = vld [vmem:[#allocation4 + $0x3c8] sm:$0xff] }
 0x223   :  { %1819 = vmatpush3.bf16.msra.mxu0 %v1818_v55  ;;  %v666_v55 = vld [vmem:[#allocation4 + $0x2c0] sm:$0xff] }
 0x224   :  { %1820 = vmatprep.subr.bf16.mxu0 %v2082_v0  ;;  %v1872_v57 = vpack.c.bf16 %v667_v56, %v666_v55 }
 0x227   :  { %1822 = vmatpush3.bf16.msra.mxu0 %v1821_v58  ;;  %v1131_v58 = vld [vmem:[%s2330_s4 + $0x3] ss:$0 sm:$0xff] }
 0x228   :  { %1823 = vmatprep.subr.bf16.mxu0 %v2082_v0 }
 0x22b   :  { %1825 = vmatpush3.bf16.msra.mxu0 %v1824_v61 }
 0x22c   :  { %1826 = vmatprep.subr.bf16.mxu0 %v2082_v0 }
 0x22f   :  { %1828 = vmatpush3.bf16.msra.mxu0 %v1827_v7  ;;  %v672_v7 = vld [vmem:[#allocation4 + $0x2f0] sm:$0xff] }
 0x230   :  { %1829 = vmatprep.subr.bf16.mxu0 %v2082_v0  ;;  %v1881_v9 = vpack.c.bf16 %v673_v8, %v672_v7  ;;  %v947_v7 = vld [vmem:[#allocation4 + $0x408] sm:$0xff]  ;;  %v948_v8 = vld [vmem:[#allocation4 + $0x410] sm:$0xff] }
 0x233   :  { %1831 = vmatpush3.bf16.msra.mxu0 %v1830_v10  ;;  %v754_v10 = vld [vmem:[#allocation4 + $0x300] sm:$0xff] }
 0x234   :  { %1832 = vmatprep.subr.bf16.mxu0 %v2082_v0 }
 0x237   :  { %1834 = vmatpush3.bf16.msra.mxu0 %v1833_v13  ;;  %v1884_v13 = vpack.c.bf16 %v755_v11, %v754_v10  ;;  %v949_v10 = vld [vmem:[#allocation4 + $0x418] sm:$0xff] }
 0x238   :  { %1859 = vmatprep.subr.bf16.mxu0 %v2082_v0  ;;  %v1935_v11 = vpack.c.bf16 %v949_v10, %v948_v8 }
 0x2ed   :  { %v364_v63 = vpop.f32.mrb[2].mxu0 }
 0x2ee   :  { %v365_v2 = vadd.f32 %v1127_v62, %v364_v63  ;;  %v1434_v3 = vpop.f32.mrb[3].mxu0  ;;  %v668_v63 = vld [vmem:[#allocation4 + $0x2d0] sm:$0xff] }
 0x2f0   :  { %1991 = vtanh.f32 %v365_v2  ;;  %v669_v2 = vld [vmem:[#allocation4 + $0x2d8] sm:$0xff] }
 0x2f1   :  { %v1875_v3 = vpack.c.bf16 %v669_v2, %v668_v63  ;;  %v863_v63 = vld [vmem:[#allocation4 + $0x3e8] sm:$0xff] }
 0x2fa   :  { %v1992_v4 = vpop.eup %1991 }
 0x2fb   :  { %1468 = vmatmul.mubr.f32.vlgmr.msra.gmra.mrb[2].mxu1 %v1992_v4  ;;  %v670_v4 = vld [vmem:[#allocation4 + $0x2e0] sm:$0xff] }
 0x2fc   :  { %1537 = vmatprep.mubr.msk.f32.mxu1 %vm2083_vm0, %v2084_v1  ;;  %1837 = vmatpush3.bf16.msra.mxu1 %v1836_v17  ;;  %v1878_v6 = vpack.c.bf16 %v671_v5, %v670_v4  ;;  %v759_v17 = vld [vmem:[#allocation4 + $0x328] sm:$0xff]  ;;  %v865_v4 = vld [vmem:[#allocation4 + $0x3f8] sm:$0xff] }
 0x2fd   :  { %1838 = vmatprep.subr.bf16.mxu1 %v2082_v0  ;;  %v1890_v18 = vpack.c.bf16 %v759_v17, %v758_v16  ;;  %v953_v16 = vld [vmem:[#allocation4 + $0x438] sm:$0xff] }
 0x300   :  { %1840 = vmatpush3.bf16.msra.mxu1 %v1839_v19  ;;  %v760_v19 = vld [vmem:[#allocation4 + $0x330] sm:$0xff] }
 0x301   :  { %1841 = vmatprep.subr.bf16.mxu1 %v2082_v0  ;;  %v1893_v21 = vpack.c.bf16 %v761_v20, %v760_v19  ;;  %v955_v19 = vld [vmem:[#allocation4 + $0x448] sm:$0xff] }
 0x304   :  { %1843 = vmatpush3.bf16.msra.mxu1 %v1842_v22  ;;  %v762_v22 = vld [vmem:[#allocation4 + $0x340] sm:$0xff] }
 0x305   :  { %1844 = vmatprep.subr.bf16.mxu1 %v2082_v0  ;;  %v1896_v24 = vpack.c.bf16 %v763_v23, %v762_v22 }
 0x308   :  { %1846 = vmatpush3.bf16.msra.mxu1 %v1845_v25  ;;  %v1133_v25 = vld [vmem:[%s2330_s4 + $0x4] ss:$0 sm:$0xff] }
 0x309   :  { %1847 = vmatprep.subr.bf16.mxu1 %v2082_v0 }
 0x30c   :  { %1849 = vmatpush3.bf16.msra.mxu1 %v1848_v28 }
 0x30d   :  { %1850 = vmatprep.subr.bf16.mxu1 %v2082_v0 }
 0x310   :  { %1852 = vmatpush3.bf16.msra.mxu1 %v1851_v36  ;;  %v768_v36 = vld [vmem:[#allocation4 + $0x370] sm:$0xff] }
 0x311   :  { %1853 = vmatprep.subr.bf16.mxu1 %v2082_v0  ;;  %v1905_v38 = vpack.c.bf16 %v769_v37, %v768_v36  ;;  %v85_v36 = vld [vmem:[#allocation6 + $0x8] sm:$0xff]  ;;  %v86_v37 = vld [vmem:[#allocation6 + $0x10] sm:$0xff] }
 0x314   :  { %1855 = vmatpush3.bf16.msra.mxu1 %v1854_v39  ;;  %v850_v39 = vld [vmem:[#allocation4 + $0x380] sm:$0xff] }
 0x315   :  { %1856 = vmatprep.subr.bf16.mxu1 %v2082_v0 }
 0x318   :  { %1858 = vmatpush3.bf16.msra.mxu1 %v1857_v42  ;;  %v1908_v42 = vpack.c.bf16 %v851_v40, %v850_v39  ;;  %v88_v40 = vld [vmem:[#allocation6 + $0x20] sm:$0xff] }
 0x319   :  { %1883 = vmatprep.subr.bf16.mxu1 %v2082_v0 }
 0x3ce   :  { %v460_v30 = vpop.f32.mrb[2].mxu1 }
 0x3cf   :  { %v461_v31 = vadd.f32 %v1129_v29, %v460_v30  ;;  %v1469_v32 = vpop.f32.mrb[3].mxu1  ;;  %v764_v30 = vld [vmem:[#allocation4 + $0x350] sm:$0xff] }
 0x3d1   :  { %1993 = vtanh.f32 %v461_v31  ;;  %v765_v31 = vld [vmem:[#allocation4 + $0x358] sm:$0xff] }
 0x3d2   :  { %v1899_v32 = vpack.c.bf16 %v765_v31, %v764_v30  ;;  %v959_v30 = vld [vmem:[#allocation4 + $0x468] sm:$0xff] }
 0x3db   :  { %v1994_v33 = vpop.eup %1993 }
 0x3dc   :  { %1503 = vmatmul.mubr.f32.vlgmr.msra.gmra.mrb[4].mxu0 %v1994_v33  ;;  %v766_v33 = vld [vmem:[#allocation4 + $0x360] sm:$0xff] }
 0x3dd   :  { %1572 = vmatprep.mubr.msk.f32.mxu0 %vm2083_vm0, %v2084_v1  ;;  %1861 = vmatpush3.bf16.msra.mxu0 %v1860_v46  ;;  %v1902_v35 = vpack.c.bf16 %v767_v34, %v766_v33  ;;  %v855_v46 = vld [vmem:[#allocation4 + $0x3a8] sm:$0xff]  ;;  %v961_v33 = vld [vmem:[#allocation4 + $0x478] sm:$0xff] }
 0x3de   :  { %1862 = vmatprep.subr.bf16.mxu0 %v2082_v0  ;;  %v1914_v47 = vpack.c.bf16 %v855_v46, %v854_v45  ;;  %v92_v46 = vld [vmem:[#allocation6 + $0x40] sm:$0xff] }
 0x3e1   :  { %1864 = vmatpush3.bf16.msra.mxu0 %v1863_v48  ;;  %v856_v48 = vld [vmem:[#allocation4 + $0x3b0] sm:$0xff] }
 0x3e2   :  { %1865 = vmatprep.subr.bf16.mxu0 %v2082_v0  ;;  %v1917_v50 = vpack.c.bf16 %v857_v49, %v856_v48  ;;  %v1139_v49 = vld [vmem:[%s2330_s4 + $0x7] ss:$0 sm:$0xff] }
 0x3e5   :  { %1867 = vmatpush3.bf16.msra.mxu0 %v1866_v51  ;;  %v858_v51 = vld [vmem:[#allocation4 + $0x3c0] sm:$0xff] }
 0x3e6   :  { %1868 = vmatprep.subr.bf16.mxu0 %v2082_v0  ;;  %v1920_v53 = vpack.c.bf16 %v859_v52, %v858_v51 }
 0x3e9   :  { %1870 = vmatpush3.bf16.msra.mxu0 %v1869_v54  ;;  %v1135_v54 = vld [vmem:[%s2330_s4 + $0x5] ss:$0 sm:$0xff] }
 0x3ea   :  { %1871 = vmatprep.subr.bf16.mxu0 %v2082_v0 }
 0x3ed   :  { %1873 = vmatpush3.bf16.msra.mxu0 %v1872_v57 }
 0x3ee   :  { %1874 = vmatprep.subr.bf16.mxu0 %v2082_v0 }
 0x3f1   :  { %1876 = vmatpush3.bf16.msra.mxu0 %v1875_v3  ;;  %v864_v3 = vld [vmem:[#allocation4 + $0x3f0] sm:$0xff] }
 0x3f2   :  { %1877 = vmatprep.subr.bf16.mxu0 %v2082_v0  ;;  %v1929_v5 = vpack.c.bf16 %v865_v4, %v864_v3 }
 0x3f5   :  { %1879 = vmatpush3.bf16.msra.mxu0 %v1878_v6  ;;  %v946_v6 = vld [vmem:[#allocation4 + $0x400] sm:$0xff] }
 0x3f6   :  { %1880 = vmatprep.subr.bf16.mxu0 %v2082_v0 }
 0x3f9   :  { %1882 = vmatpush3.bf16.msra.mxu0 %v1881_v9  ;;  %v1932_v9 = vpack.c.bf16 %v947_v7, %v946_v6  ;;  %v1142_v6 = vld [vmem:[%s2332_s6] ss:$0 sm:$0xff] }
 0x3fa   :  { %1907 = vmatprep.subr.bf16.mxu0 %v2082_v0 }
 0x4af   :  { %v556_v59 = vpop.f32.mrb[4].mxu0 }
 0x4b0   :  { %v557_v60 = vadd.f32 %v1131_v58, %v556_v59  ;;  %v1504_v61 = vpop.f32.mrb[5].mxu0  ;;  %v860_v59 = vld [vmem:[#allocation4 + $0x3d0] sm:$0xff] }
 0x4b2   :  { %1995 = vtanh.f32 %v557_v60  ;;  %v861_v60 = vld [vmem:[#allocation4 + $0x3d8] sm:$0xff] }
 0x4b3   :  { %v1923_v61 = vpack.c.bf16 %v861_v60, %v860_v59  ;;  %v98_v60 = vld [vmem:[#allocation6 + $0x70] sm:$0xff] }
 0x4bc   :  { %v1996_v62 = vpop.eup %1995 }
 0x4bd   :  { %1538 = vmatmul.mubr.f32.vlgmr.msra.gmra.mrb[4].mxu1 %v1996_v62  ;;  %v862_v62 = vld [vmem:[#allocation4 + $0x3e0] sm:$0xff] }
 0x4be   :  { %1607 = vmatprep.mubr.msk.f32.mxu1 %vm2083_vm0, %v2084_v1  ;;  %1885 = vmatpush3.bf16.msra.mxu1 %v1884_v13  ;;  %v1926_v2 = vpack.c.bf16 %v863_v63, %v862_v62  ;;  %v951_v13 = vld [vmem:[#allocation4 + $0x428] sm:$0xff]  ;;  %v1141_v63 = vld [vmem:[%s2330_s4 + $0x8] ss:$0 sm:$0xff] }
 0x4bf   :  { %1886 = vmatprep.subr.bf16.mxu1 %v2082_v0  ;;  %v1938_v14 = vpack.c.bf16 %v951_v13, %v950_v12 }
 0x4c2   :  { %1888 = vmatpush3.bf16.msra.mxu1 %v1887_v15  ;;  %v952_v15 = vld [vmem:[#allocation4 + $0x430] sm:$0xff] }
 0x4c3   :  { %1889 = vmatprep.subr.bf16.mxu1 %v2082_v0  ;;  %v1941_v17 = vpack.c.bf16 %v953_v16, %v952_v15 }
 0x4c6   :  { %1891 = vmatpush3.bf16.msra.mxu1 %v1890_v18  ;;  %v954_v18 = vld [vmem:[#allocation4 + $0x440] sm:$0xff] }
 0x4c7   :  { %1892 = vmatprep.subr.bf16.mxu1 %v2082_v0  ;;  %v1944_v20 = vpack.c.bf16 %v955_v19, %v954_v18 }
 0x4ca   :  { %1894 = vmatpush3.bf16.msra.mxu1 %v1893_v21  ;;  %v1137_v21 = vld [vmem:[%s2330_s4 + $0x6] ss:$0 sm:$0xff] }
 0x4cb   :  { %1895 = vmatprep.subr.bf16.mxu1 %v2082_v0 }
 0x4ce   :  { %1897 = vmatpush3.bf16.msra.mxu1 %v1896_v24 }
 0x4cf   :  { %1898 = vmatprep.subr.bf16.mxu1 %v2082_v0 }
 0x4d2   :  { %1900 = vmatpush3.bf16.msra.mxu1 %v1899_v32  ;;  %v960_v32 = vld [vmem:[#allocation4 + $0x470] sm:$0xff] }
 0x4d3   :  { %1901 = vmatprep.subr.bf16.mxu1 %v2082_v0  ;;  %v1953_v34 = vpack.c.bf16 %v961_v33, %v960_v32 }
 0x4d6   :  { %1903 = vmatpush3.bf16.msra.mxu1 %v1902_v35  ;;  %v84_v35 = vld [vmem:[#allocation6] sm:$0xff] }
 0x4d7   :  { %1904 = vmatprep.subr.bf16.mxu1 %v2082_v0 }
 0x4da   :  { %1906 = vmatpush3.bf16.msra.mxu1 %v1905_v38  ;;  %v87_v38 = vld [vmem:[#allocation6 + $0x18] sm:$0xff] }
 0x4db   :  { %1931 = vmatprep.subr.bf16.mxu1 %v2082_v0  ;;  %v1959_v39 = vpack.c.bf16 %v87_v38, %v86_v37 }
 0x590   :  { %v652_v26 = vpop.f32.mrb[4].mxu1 }
 0x591   :  { %v653_v27 = vadd.f32 %v1133_v25, %v652_v26  ;;  %v1539_v28 = vpop.f32.mrb[5].mxu1  ;;  %v956_v26 = vld [vmem:[#allocation4 + $0x450] sm:$0xff] }
 0x593   :  { %1997 = vtanh.f32 %v653_v27  ;;  %v957_v27 = vld [vmem:[#allocation4 + $0x458] sm:$0xff] }
 0x594   :  { %v1947_v28 = vpack.c.bf16 %v957_v27, %v956_v26 }
 0x59d   :  { %v1998_v29 = vpop.eup %1997 }
 0x59e   :  { %1573 = vmatmul.mubr.f32.vlgmr.msra.gmra.mrb[6].mxu0 %v1998_v29  ;;  %v958_v29 = vld [vmem:[#allocation4 + $0x460] sm:$0xff] }
 0x59f   :  { %1642 = vmatprep.mubr.msk.f32.mxu0 %vm2083_vm0, %v2084_v1  ;;  %1909 = vmatpush3.bf16.msra.mxu0 %v1908_v42  ;;  %v1950_v31 = vpack.c.bf16 %v959_v30, %v958_v29  ;;  %v1962_v42 = vpack.c.bf16 %v89_v41, %v88_v40 }
 0x5a0   :  { %1910 = vmatprep.subr.bf16.mxu0 %v2082_v0 }
 0x5a3   :  { %1912 = vmatpush3.bf16.msra.mxu0 %v1911_v44  ;;  %v91_v44 = vld [vmem:[#allocation6 + $0x38] sm:$0xff] }
 0x5a4   :  { %1913 = vmatprep.subr.bf16.mxu0 %v2082_v0  ;;  %v1965_v45 = vpack.c.bf16 %v91_v44, %v90_v43 }
 0x5a7   :  { %1915 = vmatpush3.bf16.msra.mxu0 %v1914_v47  ;;  %v93_v47 = vld [vmem:[#allocation6 + $0x48] sm:$0xff] }
 0x5a8   :  { %1916 = vmatprep.subr.bf16.mxu0 %v2082_v0  ;;  %v1968_v48 = vpack.c.bf16 %v93_v47, %v92_v46 }
 0x5ab   :  { %1918 = vmatpush3.bf16.msra.mxu0 %v1917_v50 }
 0x5ac   :  { %1919 = vmatprep.subr.bf16.mxu0 %v2082_v0 }
 0x5af   :  { %1921 = vmatpush3.bf16.msra.mxu0 %v1920_v53 }
 0x5b0   :  { %1922 = vmatprep.subr.bf16.mxu0 %v2082_v0 }
 0x5b3   :  { %1924 = vmatpush3.bf16.msra.mxu0 %v1923_v61  ;;  %v99_v61 = vld [vmem:[#allocation6 + $0x78] sm:$0xff] }
 0x5b4   :  { %1925 = vmatprep.subr.bf16.mxu0 %v2082_v0  ;;  %v1977_v62 = vpack.c.bf16 %v99_v61, %v98_v60 }
 0x5b7   :  { %1927 = vmatpush3.bf16.msra.mxu0 %v1926_v2 }
 0x5b8   :  { %1928 = vmatprep.subr.bf16.mxu0 %v2082_v0 }
 0x5bb   :  { %1930 = vmatpush3.bf16.msra.mxu0 %v1929_v5 }
 0x5bc   :  { %1955 = vmatprep.subr.bf16.mxu0 %v2082_v0 }
 0x671   :  { %v748_v55 = vpop.f32.mrb[6].mxu0 }
 0x672   :  { %v749_v56 = vadd.f32 %v1135_v54, %v748_v55  ;;  %v1574_v57 = vpop.f32.mrb[7].mxu0  ;;  %v94_v54 = vld [vmem:[#allocation6 + $0x50] sm:$0xff]  ;;  %v95_v55 = vld [vmem:[#allocation6 + $0x58] sm:$0xff] }
 0x673   :  { %v96_v57 = vld [vmem:[#allocation6 + $0x60] sm:$0xff] }
 0x674   :  { %1999 = vtanh.f32 %v749_v56  ;;  %v1971_v56 = vpack.c.bf16 %v95_v55, %v94_v54 }
 0x67e   :  { %v2000_v58 = vpop.eup %1999 }
 0x67f   :  { %1608 = vmatmul.mubr.f32.vlgmr.msra.gmra.mrb[6].mxu1 %v2000_v58  ;;  %v97_v58 = vld [vmem:[#allocation6 + $0x68] sm:$0xff] }
 0x680   :  { %1677 = vmatprep.mubr.msk.f32.mxu1 %vm2083_vm0, %v2084_v1  ;;  %1933 = vmatpush3.bf16.msra.mxu1 %v1932_v9  ;;  %v1974_v59 = vpack.c.bf16 %v97_v58, %v96_v57 }
 0x681   :  { %1934 = vmatprep.subr.bf16.mxu1 %v2082_v0 }
 0x684   :  { %1936 = vmatpush3.bf16.msra.mxu1 %v1935_v11 }
 0x685   :  { %1937 = vmatprep.subr.bf16.mxu1 %v2082_v0 }
 0x688   :  { %1939 = vmatpush3.bf16.msra.mxu1 %v1938_v14 }
 0x689   :  { %1940 = vmatprep.subr.bf16.mxu1 %v2082_v0 }
 0x68c   :  { %1942 = vmatpush3.bf16.msra.mxu1 %v1941_v17 }
 0x68d   :  { %1943 = vmatprep.subr.bf16.mxu1 %v2082_v0 }
 0x690   :  { %1945 = vmatpush3.bf16.msra.mxu1 %v1944_v20 }
 0x691   :  { %1946 = vmatprep.subr.bf16.mxu1 %v2082_v0 }
 0x694   :  { %1948 = vmatpush3.bf16.msra.mxu1 %v1947_v28 }
 0x695   :  { %1949 = vmatprep.subr.bf16.mxu1 %v2082_v0 }
 0x698   :  { %1951 = vmatpush3.bf16.msra.mxu1 %v1950_v31 }
 0x699   :  { %1952 = vmatprep.subr.bf16.mxu1 %v2082_v0 }
 0x69c   :  { %1954 = vmatpush3.bf16.msra.mxu1 %v1953_v34 }
 0x752   :  { %v844_v22 = vpop.f32.mrb[6].mxu1 }
 0x753   :  { %v845_v23 = vadd.f32 %v1137_v21, %v844_v22  ;;  %v1609_v24 = vpop.f32.mrb[7].mxu1 }
 0x755   :  { %2001 = vtanh.f32 %v845_v23 }
 0x75f   :  { %v2002_v25 = vpop.eup %2001 }
 0x760   :  { %1643 = vmatmul.mubr.f32.vlgmr.msra.gmra.mrb[8].mxu0 %v2002_v25 }
 0x761   :  { %1712 = vmatprep.mubr.msk.f32.mxu0 %vm2083_vm0, %v2084_v1  ;;  %v1956_v1 = vpack.c.bf16 %v85_v36, %v84_v35 }
 0x763   :  { %1957 = vmatpush3.bf16.msra.mxu0 %v1956_v1 }
 0x764   :  { %1958 = vmatprep.subr.bf16.mxu0 %v2082_v0 }
 0x767   :  { %1960 = vmatpush3.bf16.msra.mxu0 %v1959_v39 }
 0x768   :  { %1961 = vmatprep.subr.bf16.mxu0 %v2082_v0 }
 0x76b   :  { %1963 = vmatpush3.bf16.msra.mxu0 %v1962_v42 }
 0x76c   :  { %1964 = vmatprep.subr.bf16.mxu0 %v2082_v0 }
 0x76f   :  { %1966 = vmatpush3.bf16.msra.mxu0 %v1965_v45 }
 0x770   :  { %1967 = vmatprep.subr.bf16.mxu0 %v2082_v0 }
 0x773   :  { %1969 = vmatpush3.bf16.msra.mxu0 %v1968_v48 }
 0x774   :  { %1970 = vmatprep.subr.bf16.mxu0 %v2082_v0 }
 0x777   :  { %1972 = vmatpush3.bf16.msra.mxu0 %v1971_v56 }
 0x778   :  { %1973 = vmatprep.subr.bf16.mxu0 %v2082_v0 }
 0x77b   :  { %1975 = vmatpush3.bf16.msra.mxu0 %v1974_v59 }
 0x77c   :  { %1976 = vmatprep.subr.bf16.mxu0 %v2082_v0 }
 0x77f   :  { %1978 = vmatpush3.bf16.msra.mxu0 %v1977_v62 }
 0x833   :  { %v940_v50 = vpop.f32.mrb[8].mxu0 }
 0x834   :  { %v941_v51 = vadd.f32 %v1139_v49, %v940_v50  ;;  %v1644_v52 = vpop.f32.mrb[9].mxu0 }
 0x836   :  { %2003 = vtanh.f32 %v941_v51 }
 0x840   :  { %v2004_v53 = vpop.eup %2003 }
 0x841   :  { %1678 = vmatmul.mubr.f32.vlgmr.msra.gmra.mrb[8].mxu1 %v2004_v53 }
 0x914   :  { %v1036_v2 = vpop.f32.mrb[8].mxu1 }
 0x915   :  { %v1037_v3 = vadd.f32 %v1141_v63, %v1036_v2  ;;  %v1679_v4 = vpop.f32.mrb[9].mxu1 }
 0x917   :  { %2005 = vtanh.f32 %v1037_v3 }
 0x921   :  { %v2006_v5 = vpop.eup %2005 }
 0x922   :  { %1713 = vmatmul.mubr.f32.vlgmr.msra.gmra.mrb[10].mxu0 %v2006_v5 }
 0x9f5   :  { %v1113_v7 = vpop.f32.mrb[10].mxu0 }
 0x9f6   :  { %v1114_v8 = vadd.f32 %v1142_v6, %v1113_v7  ;;  %v1714_v9 = vpop.f32.mrb[11].mxu0 }
 0x9f8   :  { %1117 = vst [vmem:[%s2333_s7] sm:$0xff] %v1114_v8 }
 0x9f9   :  { %1122 = vsyncpa [#allocation3], 1 }
 0x9fa   :  { %1123 = vsyncpa [#allocation5], 1 }

</bundles_post_ra>
